<compile_context>
chip_gen: v5e
topology: v5e:2x2
jax: 0.10.0
libtpu: 0.0.40
codegen_flags: <defaults>
</compile_context>

<pallas_src>
import jax
import jax.numpy as jnp
import numpy as np
from jax.experimental import pallas as pl
from jax.experimental.pallas import tpu as pltpu

KSIZE = 7
PAD = (KSIZE - 1) // 2          # 3
ROW_CHUNK = 8                   # conv rows per chunk (sublane-aligned)


def _round_up(x, m):
    return (x + m - 1) // m * m


def _choose_tile_h(C, H, W, itemsize, target_bytes, prefer_even_splits=False):
    """Tile height: divides H, multiple of 8, lane-aligned (TH*W % 128 == 0),
    x block roughly <= target_bytes (dtype-aware).  Prefers >= 2 tiles along H
    (pipelining / megacore); falls back to the full H."""
    cands = [th for th in range(8, H + 1, 8)
             if H % th == 0 and (th * W) % 128 == 0]
    if not cands:
        return H

    def blk(th):
        return C * th * W * itemsize

    fitting = [th for th in cands if blk(th) <= target_bytes]
    if not fitting:
        # Smallest legal tile caps VMEM.  (A C-tiling escape hatch would be
        # needed if even this exceeds the v7x budget -- unrealistic for CBAM.)
        return min(cands)
    sub = [th for th in fitting if H // th >= 2]
    if not sub:
        return max(fitting)
    if prefer_even_splits:
        even = [th for th in sub if (H // th) % 2 == 0]
        if even:
            return max(even)
    return max(sub)


def _pool_kernel(x_ref, pooled_ref):
    # x_ref: (1, C, T) in x dtype; pooled_ref: (1, 2, T) f32.  T = TH*W.
    x = x_ref[0]                                           # (C, T)
    c = x.shape[0]
    pooled_ref[0, 0:1, :] = jnp.max(x, axis=0, keepdims=True).astype(jnp.float32)
    pooled_ref[0, 1:2, :] = (jnp.sum(x.astype(jnp.float32), axis=0,
                                     keepdims=True) * (1.0 / c))


def _conv_kernel(w_ref, b_ref, pooled_ref, scale_ref):
    # w_ref: SMEM (2*7*7,) f32 (OIHW flattened); b_ref: SMEM (1,) f32
    # pooled_ref: VMEM (1, 2, Hp, Wp) f32 zero-padded pooled map (whole sample)
    # scale_ref:  VMEM (1, TH, W) f32 -- sigmoid(conv) for this H-tile
    _, TH, W = scale_ref.shape
    Wp = pooled_ref.shape[3]
    tile_row0 = pl.program_id(1) * TH   # top output row of this tile

    def conv_chunk(row0, nrows):
        # row0 is the (padded-space) top row of the chunk; output row r uses
        # padded rows r..r+6, so we load nrows + 2*PAD rows of each channel.
        rows = nrows + 2 * PAD
        pmax = pooled_ref[0, 0, pl.ds(row0, rows), :]      # (rows, Wp)
        pmean = pooled_ref[0, 1, pl.ds(row0, rows), :]
        # 4 independent partial accumulators, full lane width, register-sized.
        accs = [jnp.zeros((nrows, Wp), jnp.float32) for _ in range(4)]
        tap = 0
        for kx in range(KSIZE):
            # Hoisted lane shift: one XLU roll per (channel, kx).  Wrapped
            # columns land beyond W and are zero-padded (Wp >= W + 2*PAD).
            if kx == 0:
                smax, smean = pmax, pmean
            else:
                smax = pltpu.roll(pmax, shift=Wp - kx, axis=1)
                smean = pltpu.roll(pmean, shift=Wp - kx, axis=1)
            for ky in range(KSIZE):
                wm = w_ref[ky * KSIZE + kx]
                wa = w_ref[KSIZE * KSIZE + ky * KSIZE + kx]
                accs[tap & 3] = accs[tap & 3] + (wm * smax[ky:ky + nrows, :]
                                                 + wa * smean[ky:ky + nrows, :])
                tap += 1
        conv = (accs[0] + accs[1]) + (accs[2] + accs[3]) + b_ref[0]
        return jax.nn.sigmoid(conv[:, :W])

    n_full, rem = divmod(TH, ROW_CHUNK)
    if n_full <= 4:
        # Few chunks: static Python unroll (aligned static store offsets).
        for ci in range(n_full):
            r0 = pl.multiple_of(tile_row0 + ci * ROW_CHUNK, ROW_CHUNK)
            scale_ref[0, ci * ROW_CHUNK:(ci + 1) * ROW_CHUNK, :] = conv_chunk(
                r0, ROW_CHUNK)
    else:
        # Many chunks: rolled loop keeps the program small; all offsets stay
        # multiples of 8 (sublane-aligned loads/stores).
        def body(ci, carry):
            r0 = pl.multiple_of(tile_row0 + ci * ROW_CHUNK, ROW_CHUNK)
            scale_ref[0, pl.ds(ci * ROW_CHUNK, ROW_CHUNK), :] = conv_chunk(
                r0, ROW_CHUNK)
            return carry
        jax.lax.fori_loop(0, n_full, body, 0, unroll=False)
    if rem:
        scale_ref[0, n_full * ROW_CHUNK:TH, :] = conv_chunk(
            tile_row0 + n_full * ROW_CHUNK, rem)


def _rescale_kernel(x_ref, scale_ref, o_ref):
    # x_ref/o_ref: (1, C, T); scale_ref: (1, 1, 1, T) f32
    s = scale_ref[0, 0]                                    # (1, T) f32
    o_ref[0] = (x_ref[0].astype(jnp.float32) * s).astype(o_ref.dtype)


def spatial_gate(x, w, b, *, target_block_bytes=4 << 20):
    """x: (N, C, H, W); w: (1, 2, 7, 7); b: (1,)"""
    N, C, H, W = x.shape
    isz = x.dtype.itemsize
    TH = _choose_tile_h(C, H, W, isz, target_block_bytes,
                        prefer_even_splits=(N == 1))
    nH = H // TH
    T = TH * W
    HW = H * W

    x_flat = x.reshape(N, C, HW)
    w_flat = w.reshape(-1).astype(jnp.float32)
    b_flat = b.astype(jnp.float32).reshape(1)

    # Zero-padded pooled-map geometry (for the 7x7 conv).
    Hp = _round_up(H + 2 * PAD, 8)
    Wp = max(_round_up(W + 2 * PAD, 128), 128)
    # Roll wrap-around in the conv is only safe with full column padding.
    assert Wp >= W + 2 * PAD and Hp >= H + 2 * PAD

    # VMEM budget: double-buffered blocks per call -> explicit scoped limit
    # (>= 32 MiB so v5e's 16 MiB default never rejects the larger blocks).
    blk_x = C * T * isz
    need = max(
        2 * (blk_x + 2 * T * 4),                 # pool: x in, pooled out
        2 * (2 * Hp * Wp * 4 + TH * W * 4),      # conv: pooled_pad, scale tile
        2 * (2 * blk_x + T * 4),                 # rescale: x in, out, scale row
    ) + (1 << 20)
    vmem_limit = int(min(max(need, 32 << 20), 120 << 20))
    cparams = pltpu.CompilerParams(
        dimension_semantics=("parallel", "parallel"),
        vmem_limit_bytes=vmem_limit)

    # 1) ChannelPool: (max, mean) over C, streamed lane-dense and H-tiled.
    pool_cost = pl.CostEstimate(
        flops=2 * N * C * HW, transcendentals=0,
        bytes_accessed=N * C * HW * isz + N * 2 * HW * 4)
    pooled = pl.pallas_call(
        _pool_kernel,
        out_shape=jax.ShapeDtypeStruct((N, 2, HW), jnp.float32),
        grid=(N, nH),
        in_specs=[pl.BlockSpec((1, C, T), lambda n, h: (n, 0, h))],
        out_specs=pl.BlockSpec((1, 2, T), lambda n, h: (n, 0, h)),
        compiler_params=cparams,
        cost_estimate=pool_cost,
    )(x_flat)

    # 2) Zero-pad the tiny pooled map for the 7x7 conv (XLA glue, ~2/C of x).
    pooled_pad = jnp.pad(pooled.reshape(N, 2, H, W),
                         ((0, 0), (0, 0),
                          (PAD, Hp - H - PAD), (PAD, Wp - W - PAD)))

    # 3) 7x7 conv (2 -> 1) + bias + sigmoid -> per-pixel scale, H-tiled.
    conv_cost = pl.CostEstimate(
        flops=4 * KSIZE * KSIZE * N * HW, transcendentals=N * HW,
        bytes_accessed=N * 2 * Hp * Wp * 4 + N * HW * 4)
    scale = pl.pallas_call(
        _conv_kernel,
        out_shape=jax.ShapeDtypeStruct((N, H, W), jnp.float32),
        grid=(N, nH),
        in_specs=[
            pl.BlockSpec(memory_space=pltpu.SMEM),                    # weights
            pl.BlockSpec(memory_space=pltpu.SMEM),                    # bias
            pl.BlockSpec((1, 2, Hp, Wp), lambda n, h: (n, 0, 0, 0)),  # pooled
        ],
        out_specs=pl.BlockSpec((1, TH, W), lambda n, h: (n, h, 0)),
        compiler_params=cparams,
        cost_estimate=conv_cost,
    )(w_flat, b_flat, pooled_pad)

    # 4) Rescale: out = x * scale, fully lane-dense streaming layout.
    scale_4d = scale.reshape(N, nH, 1, T)      # pure row-major reshape (free)
    resc_cost = pl.CostEstimate(
        flops=N * C * HW, transcendentals=0,
        bytes_accessed=2 * N * C * HW * isz + N * HW * 4)
    o_flat = pl.pallas_call(
        _rescale_kernel,
        out_shape=jax.ShapeDtypeStruct((N, C, HW), x.dtype),
        grid=(N, nH),
        in_specs=[
            pl.BlockSpec((1, C, T), lambda n, h: (n, 0, h)),
            pl.BlockSpec((1, 1, 1, T), lambda n, h: (n, h, 0, 0)),
        ],
        out_specs=pl.BlockSpec((1, C, T), lambda n, h: (n, 0, h)),
        compiler_params=cparams,
        cost_estimate=resc_cost,
    )(x_flat, scale_4d)
    return o_flat.reshape(N, C, H, W)


def spatial_gate_reference(x, w, b):
    """Pure-JAX reference matching the PyTorch SpatialGate forward."""
    ch_max = jnp.max(x, axis=1, keepdims=True)
    ch_mean = jnp.mean(x, axis=1, keepdims=True)
    comp = jnp.concatenate([ch_max, ch_mean], axis=1)          # (N, 2, H, W)
    out = jax.lax.conv_general_dilated(
        comp, w, window_strides=(1, 1), padding=((PAD, PAD), (PAD, PAD)),
        dimension_numbers=("NCHW", "OIHW", "NCHW"))
    out = out + b.reshape(1, 1, 1, 1)
    return x * jax.nn.sigmoid(out)


if __name__ == "__main__":
    key = jax.random.PRNGKey(0)
    kx_, kw_, kb_ = jax.random.split(key, 3)

    N, C, H, W = 2, 4, 16, 16
    x = jax.random.normal(kx_, (N, C, H, W), dtype=jnp.float32)

    # Deterministic parameter init (Conv2d(2, 1, 7, padding=3, bias=True)).
    fan_in = 2 * KSIZE * KSIZE
    bound = 1.0 / np.sqrt(fan_in)
    w = jax.random.uniform(kw_, (1, 2, KSIZE, KSIZE),
                           minval=-bound, maxval=bound, dtype=jnp.float32)
    b = jax.random.uniform(kb_, (1,), minval=-bound, maxval=bound,
                           dtype=jnp.float32)

    out = spatial_gate(x, w, b)
    out = jax.block_until_ready(out)

    ref = spatial_gate_reference(x, w, b)
    np.testing.assert_allclose(np.asarray(out), np.asarray(ref),
                               rtol=1e-5, atol=1e-5)
    print("KERNEL_OK")
</pallas_src>

<mosaic_0001>
module attributes {stable_mosaic.version = 11 : i64} {
  func.func @_pool_kernel(%arg0: i32, %arg1: i32, %arg2: memref<1x4x128xf32, #tpu.memory_space<vmem>>, %arg3: memref<1x2x128xf32, #tpu.memory_space<vmem>>) attributes {dimension_semantics = [#tpu.dimension_semantics<parallel>, #tpu.dimension_semantics<parallel>], iteration_bounds = array<i64: 2, 2>, scalar_prefetch = 0 : i64, scratch_operands = 0 : i64, tpu.core_type = #tpu.core_type<tc>, window_params = [{transform_indices = @transform_0, window_bounds = array<i64: 1, 4, 128>}, {transform_indices = @transform_1, window_bounds = array<i64: 1, 2, 128>}]} {
    %c0 = arith.constant 0 : index
    %c0_0 = arith.constant 0 : index
    %c0_1 = arith.constant 0 : index
    %0 = vector.load %arg2[%c0, %c0_0, %c0_1] : memref<1x4x128xf32, #tpu.memory_space<vmem>>, vector<1x4x128xf32>
    %1 = vector.shape_cast %0 : vector<1x4x128xf32> to vector<4x128xf32>
    %cst = arith.constant dense<0xFF800000> : vector<128xf32>
    %2 = vector.multi_reduction <maximumf>, %1, %cst [0] : vector<4x128xf32> to vector<128xf32>
    %3 = vector.shape_cast %2 : vector<128xf32> to vector<1x128xf32>
    %c0_2 = arith.constant 0 : index
    %c0_3 = arith.constant 0 : index
    %c0_4 = arith.constant 0 : index
    %4 = vector.load %arg3[%c0_2, %c0_3, %c0_4] : memref<1x2x128xf32, #tpu.memory_space<vmem>>, vector<1x1x128xf32>
    %5 = vector.shape_cast %4 : vector<1x1x128xf32> to vector<1x128xf32>
    %6 = vector.shape_cast %3 : vector<1x128xf32> to vector<1x1x128xf32>
    tpu.vector_store %arg3[%c0_2, %c0_3, %c0_4], %6 {strides = array<i32>} : memref<1x2x128xf32, #tpu.memory_space<vmem>>, vector<1x1x128xf32>,
    %cst_5 = arith.constant dense<0.000000e+00> : vector<128xf32>
    %7 = vector.multi_reduction <add>, %1, %cst_5 [0] : vector<4x128xf32> to vector<128xf32>
    %8 = vector.shape_cast %7 : vector<128xf32> to vector<1x128xf32>
    %cst_6 = arith.constant 2.500000e-01 : f32
    %9 = vector.broadcast %cst_6 : f32 to vector<1x128xf32>
    %10 = arith.mulf %8, %9 : vector<1x128xf32>
    %c0_7 = arith.constant 0 : index
    %c1 = arith.constant 1 : index
    %c0_8 = arith.constant 0 : index
    %11 = vector.load %arg3[%c0_7, %c1, %c0_8] : memref<1x2x128xf32, #tpu.memory_space<vmem>>, vector<1x1x128xf32>
    %12 = vector.shape_cast %11 : vector<1x1x128xf32> to vector<1x128xf32>
    %13 = vector.shape_cast %10 : vector<1x128xf32> to vector<1x1x128xf32>
    tpu.vector_store %arg3[%c0_7, %c1, %c0_8], %13 {strides = array<i32>} : memref<1x2x128xf32, #tpu.memory_space<vmem>>, vector<1x1x128xf32>,
    return
  }
  func.func @transform_0(%arg0: i32, %arg1: i32) -> (i32, i32, i32) {
    %c0_i32 = arith.constant 0 : i32
    %c0_i32_0 = arith.constant 0 : i32
    return %arg0, %c0_i32, %arg1 : i32, i32, i32
  }
  func.func @transform_1(%arg0: i32, %arg1: i32) -> (i32, i32, i32) {
    %c0_i32 = arith.constant 0 : i32
    %c0_i32_0 = arith.constant 0 : i32
    return %arg0, %c0_i32, %arg1 : i32, i32, i32
  }
}

</mosaic_0001>

<bundles_post_ra>
// kernel: tpu_custom_call.1
= control target key start
LH: loop header
LB: loop body
LE: loop exit
PB: predicated region body
PF: predicated region fallthrough
CT: control target
= control target key end

     0   :  { %6 = vsyncpa [#allocation3], 0  ;;  %s650_s0 = inlined_call_operand.hbm [shape: f32[2,4,256], index: 0, kind: input, shape index: {}]   ;;  %s651_s1 = inlined_call_operand.hbm [shape: f32[2,2,256], index: 1, kind: output, shape index: {}]  }
   0x1   :  { %8 = vsyncpa [#allocation3 + $0x1], 0 }
   0x2   :  { %9 = vsyncpa [#allocation4], 0 }
   0x3   :  { %11 = vsyncpa [#allocation4 + $0x1], 0  ;;  %s507_s6 = smov 0   ;;  %s509_s7 = smov 0  }
   0x4   :  { %s511_s8 = smov 0   ;;  %s513_s9 = smov 0  }
   0x5   :  { %s515_s10 = smov 0   ;;  %s517_s11 = smov 0  }
   0x6   :  { %s519_s12 = smov 0   ;;  %s521_s13 = smov 0  }
   0x7 LB: > { %s274_s14 = sadd.s32 4294967295, %s495_s13   ;;  %s275_s15 = sadd.s32 4294967294, %s495_s13   ;;  %s495_s13 = sphi %s521_s13, %s17_s13   ;;  %s491_s12 = sphi %s519_s12, %s662_s12   ;;  %s487_s11 = sphi %s517_s11, %s661_s11   ;;  %s483_s10 = sphi %s515_s10, %s660_s10   ;;  %s479_s9 = sphi %s513_s9, %s659_s9   ;;  %s475_s8 = sphi %s511_s8, %s658_s8   ;;  %s471_s7 = sphi %s509_s7, %s657_s7   ;;  %s467_s6 = sphi %s507_s6, %s656_s6  }
   0x8   : > { %s26_s16 = sadd.s32 1, %s487_s11  ;;  %s29_s17 = sadd.s32 1, %s491_s12 }
   0x9   : > { %p27_p0 = scmp.ge.s32.totalorder %s26_s16, 2  ;;  %s38_s18 = sadd.s32 1, %s475_s8 }
   0xa   : > { %p45_p1 = scmp.ne.s32.totalorder %s475_s8, %s471_s7  ;;  %p46_p2 = scmp.eq.s32.totalorder %s495_s13, 0 }
   0xb   : > { %s664_s16 = smov (%p27_p0, %s26_s16), 0  ;;  %s666_s17 = smov (!%p27_p0, %s29_s17), %s491_s12 }
   0xc   : > { %s34_s19 = ssub.s32 %s487_s11, %s664_s16  ;;  %p560_p3 = por %p46_p2, %p45_p1 }
   0xd   : > { %p31_p4 = scmp.ge.s32.totalorder %s666_s17, 2  ;;  %p51_p5 = scmp.ne.s32.totalorder %s471_s7, %s467_s6 }
   0xe   : > { %p52_p6 = scmp.eq.s32.totalorder %s274_s14, 0  ;;  %p77_p7 = scmp.eq.s32.totalorder %s274_s14, 3 }
   0xf   : > { %s668_s17 = smov (%p31_p4, %s666_s17), 0  ;;  %p83_p10 = scmp.eq.s32.totalorder %s275_s15, 3 }
  0x10   : > { %p568_p8 = por %p52_p6, %p51_p5  ;;  %p572_p9 = por %p77_p7, %p45_p1 }
  0x11   : > { %s33_s23 = ssub.s32 %s491_s12, %s668_s17  ;;  %p578_p12 = por %p83_p10, %p51_p5 }
  0x12   : > { %s35_s24 = sor.u32 %s34_s19, %s33_s23  ;;  %p301_p13 = scmp.lt.s32.totalorder %s495_s13, 4 }
  0x13   : > { %p36_p11 = scmp.eq.s32.totalorder %s35_s24, 0  ;;  %s103_s26 = sand.u32 1, %s475_s8  }
  0x14   : > { %s278_s28 = sshll.u32 %s103_s26, 2  ;;  %s279_s29 = sshll.u32 %s491_s12, 1 }
  0x15   : > { %s585_s27 = scalar_select %p36_p11, %s475_s8, %s38_s18  }
  0x16   : > { %s111_s30 = sadd.s32 %s487_s11, %s279_s29  ;;  %s107_s2 = scalar_lea.vmem [#allocation2], %s278_s28 }
  0x17   : > { %s117_s3 = sshll.u32 %s107_s2, 4  ;;  %s280_s4 = sshll.u32 %s111_s30, 2  ;;  %s118_s3 = int_to_ptr.vmem [resolvable:$true] %s117_s3 }
  0x18   : > { %s113_s15 = scalar_lea.hbm %s650_s0, %s280_s4  ;;  %p294_p0 = pnand %p301_p13, %p560_p3 }
  0x19   : > { %s115_s19 = sshll.u32 %s113_s15, 4  ;;  %p281_p1 = scmp.ge.s32.totalorder %s495_s13, 1  ;;  %s116_s19 = int_to_ptr.hbm [resolvable:$true] %s115_s19 }
  0x1a   : > { %s104_s23 = scalar_lea.sflag [#allocation3], %s103_s26  ;;  %p122_p2 = scmp.lt.s32.totalorder %s495_s13, 5 }
  0x1b   : > { %296 = dma.hbm_to_vmem [thread:$0]  (!%p294_p0), %s116_s19, 64, %s118_s3, %s104_s23  }
  0x1c   : > { %p123_p4 = pnand %p281_p1, %p122_p2 }
  0x1d   : > { %s597_s18 = sand.u32 (!%p123_p4), 1, %s471_s7  }
  0x1e   : > { %126 = sbr.rel (%p123_p4) target bundleno = 55 (0x37), region = 24  ;;  %s282_s24 = sshll.u32 (!%p123_p4), %s597_s18, 2 }
  0x1f   : > { %s129_s28 = scalar_lea.sflag (!%p123_p4), [#allocation3], %s597_s18  ;;  %s132_s29 = scalar_lea.vmem (!%p123_p4), [#allocation2], %s282_s24 }
  0x23   : > { %458 = dma.done.wait (%p568_p8), %s129_s28, 64  }
  0x24   : > { %460 = vsyncadd (%p568_p8), %s129_s28, 4294967232  ;;  %vm153_vm0 = vcmask 1043456   ;;  %s285_s20 = sshll.u32 %s483_s10, 1  ;;  %v152_v0 = vld [vmem:[%s132_s29] sm:$0xf]  ;;  %s283_s30 = sshll.u32 %s597_s18, 1 }
  0x25   : > { %v154_v1 = vsel %vm153_vm0, %v152_v0, -inf  ;;  %v162_v2 = vsel %vm153_vm0, %v152_v0, 0.0  ;;  %s182_s26 = sadd.s32 %s479_s9, %s285_s20  ;;  %s151_s10 = scalar_lea.vmem [#allocation5], %s283_s30 }
  0x26   : > { %v155_v3 = vrot.slane %v154_v1, 4  ;;  %v163_v4 = vrot.slane %v162_v2, 4  ;;  %s286_s2 = sshll.u32 %s182_s26, 1  ;;  %s186_s5 = sshll.u32 %s151_s10, 4  ;;  %s187_s5 = int_to_ptr.vmem [resolvable:$true] %s186_s5 }
  0x27   : > { %s184_s4 = scalar_lea.hbm %s651_s1, %s286_s2  ;;  %s172_s9 = scalar_lea.sflag [#allocation4], %s597_s18 }
  0x28   : > { %v156_v5 = vmax.f32 %v154_v1, %v155_v3  ;;  %v164_v6 = vadd.f32 %v163_v4, %v162_v2  ;;  %s188_s14 = sshll.u32 %s184_s4, 4  ;;  %s417_s28 = scalar_lea.hbm %s651_s1, 8  ;;  %s189_s14 = int_to_ptr.hbm [resolvable:$true] %s188_s14 }
  0x29   : > { %s411_s15 = sshra.s32 %s189_s14, 4  ;;  %s412_s15 = int_to_ptr.hbm [resolvable:$true] %s411_s15 }
  0x2a   : > { %v157_v7 = vrot.slane %v156_v5, 2  ;;  %v165_v8 = vrot.slane %v164_v6, 2  ;;  %s413_s19 = scalar_lea.hbm %s412_s15, 2  ;;  %p418_p7 = scmp.lt.s32.totalorder %s412_s15, %s651_s1 }
  0x2b   : > { %p414_p3 = scmp.ne.s32.totalorder %s412_s15, %s413_s19  ;;  %p419_p8 = scmp.lt.s32.totalorder %s417_s28, %s413_s19 }
  0x2c   : > { %v158_v9 = vmax.f32 %v156_v5, %v157_v7  ;;  %v166_v10 = vadd.f32 %v165_v8, %v164_v6 }
  0x2d   : > { %p415_p5 = pnand %p414_p3, %p572_p9  ;;  %p420_p10 = por %p419_p8, %p418_p7 }
  0x2e   : > { %v159_v11 = vrot.slane %v158_v9, 1  ;;  %v167_v12 = vrot.slane %v166_v10, 1 }
  0x2f   : > { %p416_p6 = pneg %p415_p5 }
  0x30   : > { %v160_v13 = vmax.f32 %v158_v9, %v159_v11  ;;  %v168_v14 = vadd.f32 %v167_v12, %v166_v10 }
  0x31   : > { %p421_p11 = pnand %p420_p10, %p416_p6 }
  0x32   : > { %161 = vst [vmem:[%s151_s10] sm:$0x1] %v160_v13  ;;  %v169_v15 = vmul.f32 0.25, %v168_v14 }
  0x34   : > { %170 = vst [vmem:[%s151_s10 + $0x1] sm:$0x1] %v169_v15 }
  0x35   : > { %424 = shalt.err (!%p421_p11)
}
  0x36   : > { %291 = dma.vmem_to_hbm [thread:$0]  (%p572_p9), %s187_s5, 32, %s189_s14, %s172_s9  }
  0x37 PF: > { %p302_p13 = scmp.ge.s32.totalorder %s495_s13, 2  ;;  %s200_s18 = sand.u32 1, %s467_s6  }
  0x38   : > { %s201_s26 = scalar_lea.sflag [#allocation4], %s200_s18 }
  0x39   : > { %p298_p0 = pnand %p302_p13, %p578_p12 }
  0x3b   : > { %p299_p1 = pneg %p298_p0 }
  0x3d   : > { %462 = dma.done.wait (%p299_p1), %s201_s26, 32  }
  0x3e   : > { %464 = vsyncadd (%p299_p1), %s201_s26, 4294967264  ;;  %s17_s13 = sadd.s32 1, %s495_s13   ;;  %s656_s6 = smov %s471_s7 }
  0x3f   : > { %p14_p2 = scmp.ge.s32.totalorder %s17_s13, 6   ;;  %s657_s7 = smov %s475_s8 }
  0x40   : > { %s658_s8 = smov %s585_s27  ;;  %s659_s9 = smov %s487_s11 }
  0x41   : > { %s660_s10 = smov %s491_s12  ;;  %s661_s11 = smov %s664_s16 }
  0x42   : > { %s662_s12 = smov %s668_s17  ;;  %16 = sbr.rel (!%p14_p2) target bundleno = 7 (0x7), region = 69 }
  0x47   :  { %207 = vsyncpa [#allocation3], 1 }
  0x48   :  { %209 = vsyncpa [#allocation3 + $0x1], 1 }
  0x49   :  { %210 = vsyncpa [#allocation4], 1 }
  0x4a   :  { %212 = vsyncpa [#allocation4 + $0x1], 1 }

</bundles_post_ra>
